<compile_context>
chip_gen: v7x
topology: tpu7x:2x2x1
jax: 0.10.0
libtpu: 0.0.40
codegen_flags: <defaults>
</compile_context>

<pallas_src>
import functools

import jax
import jax.numpy as jnp
from jax.experimental import pallas as pl
from jax.experimental.pallas import tpu as pltpu


def _gpt_head_ce_kernel(x_ref, tgt_ref, w_ref, logits_ref, rowloss_ref,
                        m_sc, l_sc, p_sc, *, tm, tn, vocab):
    vj = pl.program_id(1)          # vocab tile  -> "arbitrary" (reduction)
    nv = pl.num_programs(1)

    # ---- per-row-tile init of the online-softmax state -----------------------
    @pl.when(vj == 0)
    def _init():
        m_sc[...] = jnp.full(m_sc.shape, -1e30, jnp.float32)
        l_sc[...] = jnp.zeros(l_sc.shape, jnp.float32)
        p_sc[...] = jnp.zeros(p_sc.shape, jnp.float32)

    # ---- lm_head tile: (tm, E) x (E, tn), bf16 MXU inputs, f32 accumulation --
    logits = jnp.dot(x_ref[...], w_ref[...],
                     preferred_element_type=jnp.float32)        # (tm, tn) f32
    logits_ref[...] = logits.astype(logits_ref.dtype)           # bf16, lane-dense

    # column ids for the target pick (and the pad mask on the last tile only)
    col = vj * tn + jax.lax.broadcasted_iota(jnp.int32, (tm, tn), 1)

    def online_update(vals):
        m_new = jnp.maximum(m_sc[...], jnp.max(vals, axis=-1, keepdims=True))
        alpha = jnp.exp(m_sc[...] - m_new)
        l_sc[...] = alpha * l_sc[...] + jnp.sum(jnp.exp(vals - m_new),
                                                axis=-1, keepdims=True)
        m_sc[...] = m_new

    if vocab % tn == 0:
        # no vocab padding anywhere -> never mask
        online_update(logits)
    else:
        @pl.when(vj < nv - 1)
        def _fast():
            online_update(logits)

        @pl.when(vj == nv - 1)
        def _masked():
            online_update(jnp.where(col < vocab, logits, -1e30))

    # picked target logit: only the tile containing the target contributes
    # (targets < vocab, so padded columns never match).
    tgt = tgt_ref[...]                                          # (tm, 1) int32
    p_sc[...] += jnp.sum(jnp.where(col == tgt, logits, 0.0),
                         axis=-1, keepdims=True)

    # ---- finalize per-row loss on the last vocab tile -------------------------
    @pl.when(vj == nv - 1)
    def _fin():
        rowloss_ref[...] = m_sc[...] + jnp.log(l_sc[...]) - p_sc[...]


def gpt_forward(idx, targets, emb_table, lm_head_w, *, tm=None, tn=None):
    """idx, targets: (B, T) int; emb_table: (V, E); lm_head_w: (V, E) torch-style."""
    B, T = idx.shape
    V, E = emb_table.shape
    BT = B * T
    assert BT % 8 == 0, "B*T must be a multiple of 8 (sublane granule)"

    if tm is None:
        tm = min(256, BT)                      # bigger row tile -> less weight re-stream
    assert BT % tm == 0
    if tn is None:
        tn = min(512, pl.cdiv(V, 128) * 128)   # 512-wide vocab tiles for v6e/v7x MXU
    v_pad = pl.cdiv(V, tn) * tn                # lane-dense vocab padding

    # Wrapper-side embedding gather in bf16 (table never enters VMEM).
    x = emb_table.astype(jnp.bfloat16)[idx.reshape(BT)]                  # (BT, E)
    tgt_col = targets.reshape(BT, 1).astype(jnp.int32)
    # One-time weight transpose + pad: (E, V_pad) bf16, MXU-native / lane-dense.
    w_t = jnp.pad(lm_head_w.astype(jnp.bfloat16).T, ((0, 0), (0, v_pad - V)))

    grid = (BT // tm, v_pad // tn)
    kernel = functools.partial(_gpt_head_ce_kernel, tm=tm, tn=tn, vocab=V)

    logits_pad, row_loss = pl.pallas_call(
        kernel,
        out_shape=(
            jax.ShapeDtypeStruct((BT, v_pad), jnp.bfloat16),
            jax.ShapeDtypeStruct((BT, 1), jnp.float32),
        ),
        grid_spec=pltpu.PrefetchScalarGridSpec(
            num_scalar_prefetch=0,
            grid=grid,
            in_specs=[
                pl.BlockSpec((tm, E), lambda i, j: (i, 0)),    # gathered x (bf16)
                pl.BlockSpec((tm, 1), lambda i, j: (i, 0)),    # targets
                pl.BlockSpec((E, tn), lambda i, j: (0, j)),    # W^T tile (bf16)
            ],
            out_specs=(
                pl.BlockSpec((tm, tn), lambda i, j: (i, j)),   # logits (bf16)
                pl.BlockSpec((tm, 1), lambda i, j: (i, 0)),    # per-row loss (f32)
            ),
            scratch_shapes=[
                pltpu.VMEM((tm, 1), jnp.float32),   # running max
                pltpu.VMEM((tm, 1), jnp.float32),   # running sum-exp
                pltpu.VMEM((tm, 1), jnp.float32),   # picked target logit
            ],
        ),
        compiler_params=pltpu.CompilerParams(
            dimension_semantics=("parallel", "arbitrary")),
    )(x, tgt_col, w_t)

    logits = logits_pad[:, :V].reshape(B, T, V)     # bf16 (halves HBM writeback)
    loss = jnp.mean(row_loss)                       # mean over B*T done once outside
    return logits, loss


if __name__ == "__main__":
    # Toy config consistent with the module: vocab=64, block_size=8, n_embd=32
    V, T, E = 64, 8, 32
    B = 2

    key = jax.random.PRNGKey(0)
    k_emb, k_w, k_idx, k_tgt = jax.random.split(key, 4)

    emb_table = jax.random.normal(k_emb, (V, E), dtype=jnp.float32)
    lm_head_w = jax.random.normal(k_w, (V, E), dtype=jnp.float32) * (1.0 / jnp.sqrt(E))

    idx = jax.random.randint(k_idx, (B, T), 0, V, dtype=jnp.int32)
    targets = jax.random.randint(k_tgt, (B, T), 0, V, dtype=jnp.int32)

    logits, loss = gpt_forward(idx, targets, emb_table, lm_head_w)
    jax.block_until_ready((logits, loss))

    # Pure-JAX reference using the same bf16-rounded operands the MXU sees
    # (bf16 inputs, f32 accumulation); softmax / CE in f32.
    x_bf = emb_table.astype(jnp.bfloat16)[idx].astype(jnp.float32)       # (B,T,E)
    w_bf = lm_head_w.astype(jnp.bfloat16).astype(jnp.float32)            # (V,E)
    ref_logits = jnp.einsum("bte,ve->btv", x_bf, w_bf)
    lse = jax.nn.logsumexp(ref_logits, axis=-1)
    picked = jnp.take_along_axis(ref_logits, targets[..., None], axis=-1)[..., 0]
    ref_loss = jnp.mean(lse - picked)

    assert logits.shape == (B, T, V)
    # Kernel logits are stored in bf16; loss is computed from the f32 accumulator.
    assert jnp.allclose(logits.astype(jnp.float32), ref_logits, atol=3e-2, rtol=3e-2)
    assert jnp.allclose(loss, ref_loss, atol=2e-3, rtol=2e-3)

    print("KERNEL_OK")
</pallas_src>

<mosaic_0001>
module attributes {stable_mosaic.version = 11 : i64} {
  func.func @_gpt_head_ce_kernel(%arg0: i32, %arg1: i32, %arg2: memref<16x32xbf16, #tpu.memory_space<vmem>>, %arg3: memref<16x1xi32, #tpu.memory_space<vmem>>, %arg4: memref<32x128xbf16, #tpu.memory_space<vmem>>, %arg5: memref<16x128xbf16, #tpu.memory_space<vmem>>, %arg6: memref<16x1xf32, #tpu.memory_space<vmem>>, %arg7: memref<16x1xf32, #tpu.memory_space<vmem>>, %arg8: memref<16x1xf32, #tpu.memory_space<vmem>>, %arg9: memref<16x1xf32, #tpu.memory_space<vmem>>) attributes {dimension_semantics = [#tpu.dimension_semantics<parallel>, #tpu.dimension_semantics<arbitrary>], iteration_bounds = array<i64: 1, 1>, scalar_prefetch = 0 : i64, scratch_operands = 3 : i64, tpu.core_type = #tpu.core_type<tc>, window_params = [{transform_indices = @transform_0, window_bounds = array<i64: 16, 32>}, {transform_indices = @transform_1, window_bounds = array<i64: 16, 1>}, {transform_indices = @transform_2, window_bounds = array<i64: 32, 128>}, {transform_indices = @transform_3, window_bounds = array<i64: 16, 128>}, {transform_indices = @transform_4, window_bounds = array<i64: 16, 1>}]} {
    %c0_i32 = arith.constant 0 : i32
    %0 = arith.cmpi eq, %arg1, %c0_i32 : i32
    %1 = arith.extui %0 : i1 to i32
    %c0_i32_0 = arith.constant 0 : i32
    %2 = arith.cmpi ne, %1, %c0_i32_0 : i32
    scf.if %2 {
      %cst_20 = arith.constant -1.000000e+30 : f32
      %31 = vector.broadcast %cst_20 : f32 to vector<16x1xf32>
      %c0_21 = arith.constant 0 : index
      %c0_22 = arith.constant 0 : index
      %32 = vector.load %arg7[%c0_21, %c0_22] : memref<16x1xf32, #tpu.memory_space<vmem>>, vector<16x1xf32>
      tpu.vector_store %arg7[%c0_21, %c0_22], %31 {strides = array<i32>} : memref<16x1xf32, #tpu.memory_space<vmem>>, vector<16x1xf32>,
      %cst_23 = arith.constant 0.000000e+00 : f32
      %33 = vector.broadcast %cst_23 : f32 to vector<16x1xf32>
      %c0_24 = arith.constant 0 : index
      %c0_25 = arith.constant 0 : index
      %34 = vector.load %arg8[%c0_24, %c0_25] : memref<16x1xf32, #tpu.memory_space<vmem>>, vector<16x1xf32>
      tpu.vector_store %arg8[%c0_24, %c0_25], %33 {strides = array<i32>} : memref<16x1xf32, #tpu.memory_space<vmem>>, vector<16x1xf32>,
      %cst_26 = arith.constant 0.000000e+00 : f32
      %35 = vector.broadcast %cst_26 : f32 to vector<16x1xf32>
      %c0_27 = arith.constant 0 : index
      %c0_28 = arith.constant 0 : index
      %36 = vector.load %arg9[%c0_27, %c0_28] : memref<16x1xf32, #tpu.memory_space<vmem>>, vector<16x1xf32>
      tpu.vector_store %arg9[%c0_27, %c0_28], %35 {strides = array<i32>} : memref<16x1xf32, #tpu.memory_space<vmem>>, vector<16x1xf32>,
    } else {
    }
    %c0 = arith.constant 0 : index
    %c0_1 = arith.constant 0 : index
    %3 = vector.load %arg2[%c0, %c0_1] : memref<16x32xbf16, #tpu.memory_space<vmem>>, vector<16x32xbf16>
    %c0_2 = arith.constant 0 : index
    %c0_3 = arith.constant 0 : index
    %4 = vector.load %arg4[%c0_2, %c0_3] : memref<32x128xbf16, #tpu.memory_space<vmem>>, vector<32x128xbf16>
    %cst = arith.constant dense<0.000000e+00> : vector<16x128xf32>
    %5 = tpu.matmul %3, %4, %cst {dimension_numbers = #tpu.dot_dimension_numbers<[1], [0], [0], [1], [0, 0, 1, 1], [], []>} : vector<16x32xbf16>, vector<32x128xbf16>, vector<16x128xf32> -> vector<16x128xf32>
    %6 = arith.truncf %5 : vector<16x128xf32> to vector<16x128xbf16>
    %c0_4 = arith.constant 0 : index
    %c0_5 = arith.constant 0 : index
    %7 = vector.load %arg5[%c0_4, %c0_5] : memref<16x128xbf16, #tpu.memory_space<vmem>>, vector<16x128xbf16>
    tpu.vector_store %arg5[%c0_4, %c0_5], %6 {strides = array<i32>} : memref<16x128xbf16, #tpu.memory_space<vmem>>, vector<16x128xbf16>,
    %c128_i32 = arith.constant 128 : i32
    %8 = arith.muli %arg1, %c128_i32 : i32
    %9 = tpu.iota {dimensions = array<i32: 1>} : vector<16x128xi32>
    %10 = vector.broadcast %8 : i32 to vector<16x128xi32>
    %11 = arith.addi %10, %9 : vector<16x128xi32>
    %c0_i32_6 = arith.constant 0 : i32
    %12 = arith.cmpi slt, %arg1, %c0_i32_6 : i32
    %13 = arith.extui %12 : i1 to i32
    %c0_i32_7 = arith.constant 0 : i32
    %14 = arith.cmpi ne, %13, %c0_i32_7 : i32
    scf.if %14 {
      %c0_20 = arith.constant 0 : index
      %c0_21 = arith.constant 0 : index
      %31 = vector.load %arg7[%c0_20, %c0_21] : memref<16x1xf32, #tpu.memory_space<vmem>>, vector<16x1xf32>
      %cst_22 = arith.constant dense<0xFF800000> : vector<16xf32>
      %32 = vector.multi_reduction <maximumf>, %5, %cst_22 [1] : vector<16x128xf32> to vector<16xf32>
      %33 = vector.shape_cast %32 : vector<16xf32> to vector<16x1xf32>
      %34 = arith.maximumf %31, %33 : vector<16x1xf32>
      %c0_23 = arith.constant 0 : index
      %c0_24 = arith.constant 0 : index
      %35 = vector.load %arg7[%c0_23, %c0_24] : memref<16x1xf32, #tpu.memory_space<vmem>>, vector<16x1xf32>
      %36 = arith.subf %35, %34 : vector<16x1xf32>
      %37 = math.exp %36 : vector<16x1xf32>
      %c0_25 = arith.constant 0 : index
      %c0_26 = arith.constant 0 : index
      %38 = vector.load %arg8[%c0_25, %c0_26] : memref<16x1xf32, #tpu.memory_space<vmem>>, vector<16x1xf32>
      %39 = arith.mulf %37, %38 : vector<16x1xf32>
      %40 = vector.broadcast %34 : vector<16x1xf32> to vector<16x128xf32>
      %41 = arith.subf %5, %40 : vector<16x128xf32>
      %42 = math.exp %41 : vector<16x128xf32>
      %cst_27 = arith.constant dense<0.000000e+00> : vector<16xf32>
      %43 = vector.multi_reduction <add>, %42, %cst_27 [1] : vector<16x128xf32> to vector<16xf32>
      %44 = vector.shape_cast %43 : vector<16xf32> to vector<16x1xf32>
      %45 = arith.addf %39, %44 : vector<16x1xf32>
      %c0_28 = arith.constant 0 : index
      %c0_29 = arith.constant 0 : index
      %46 = vector.load %arg8[%c0_28, %c0_29] : memref<16x1xf32, #tpu.memory_space<vmem>>, vector<16x1xf32>
      tpu.vector_store %arg8[%c0_28, %c0_29], %45 {strides = array<i32>} : memref<16x1xf32, #tpu.memory_space<vmem>>, vector<16x1xf32>,
      %c0_30 = arith.constant 0 : index
      %c0_31 = arith.constant 0 : index
      %47 = vector.load %arg7[%c0_30, %c0_31] : memref<16x1xf32, #tpu.memory_space<vmem>>, vector<16x1xf32>
      tpu.vector_store %arg7[%c0_30, %c0_31], %34 {strides = array<i32>} : memref<16x1xf32, #tpu.memory_space<vmem>>, vector<16x1xf32>,
    } else {
    }
    %c0_i32_8 = arith.constant 0 : i32
    %15 = arith.cmpi eq, %arg1, %c0_i32_8 : i32
    %16 = arith.extui %15 : i1 to i32
    %c0_i32_9 = arith.constant 0 : i32
    %17 = arith.cmpi ne, %16, %c0_i32_9 : i32
    scf.if %17 {
      %c64_i32 = arith.constant 64 : i32
      %31 = vector.broadcast %c64_i32 : i32 to vector<16x128xi32>
      %32 = arith.cmpi slt, %11, %31 : vector<16x128xi32>
      %cst_20 = arith.constant -1.000000e+30 : f32
      %33 = vector.broadcast %cst_20 : f32 to vector<16x128xf32>
      %34 = arith.select %32, %5, %33 : vector<16x128xi1>, vector<16x128xf32>
      %c0_21 = arith.constant 0 : index
      %c0_22 = arith.constant 0 : index
      %35 = vector.load %arg7[%c0_21, %c0_22] : memref<16x1xf32, #tpu.memory_space<vmem>>, vector<16x1xf32>
      %cst_23 = arith.constant dense<0xFF800000> : vector<16xf32>
      %36 = vector.multi_reduction <maximumf>, %34, %cst_23 [1] : vector<16x128xf32> to vector<16xf32>
      %37 = vector.shape_cast %36 : vector<16xf32> to vector<16x1xf32>
      %38 = arith.maximumf %35, %37 : vector<16x1xf32>
      %c0_24 = arith.constant 0 : index
      %c0_25 = arith.constant 0 : index
      %39 = vector.load %arg7[%c0_24, %c0_25] : memref<16x1xf32, #tpu.memory_space<vmem>>, vector<16x1xf32>
      %40 = arith.subf %39, %38 : vector<16x1xf32>
      %41 = math.exp %40 : vector<16x1xf32>
      %c0_26 = arith.constant 0 : index
      %c0_27 = arith.constant 0 : index
      %42 = vector.load %arg8[%c0_26, %c0_27] : memref<16x1xf32, #tpu.memory_space<vmem>>, vector<16x1xf32>
      %43 = arith.mulf %41, %42 : vector<16x1xf32>
      %44 = vector.broadcast %38 : vector<16x1xf32> to vector<16x128xf32>
      %45 = arith.subf %34, %44 : vector<16x128xf32>
      %46 = math.exp %45 : vector<16x128xf32>
      %cst_28 = arith.constant dense<0.000000e+00> : vector<16xf32>
      %47 = vector.multi_reduction <add>, %46, %cst_28 [1] : vector<16x128xf32> to vector<16xf32>
      %48 = vector.shape_cast %47 : vector<16xf32> to vector<16x1xf32>
      %49 = arith.addf %43, %48 : vector<16x1xf32>
      %c0_29 = arith.constant 0 : index
      %c0_30 = arith.constant 0 : index
      %50 = vector.load %arg8[%c0_29, %c0_30] : memref<16x1xf32, #tpu.memory_space<vmem>>, vector<16x1xf32>
      tpu.vector_store %arg8[%c0_29, %c0_30], %49 {strides = array<i32>} : memref<16x1xf32, #tpu.memory_space<vmem>>, vector<16x1xf32>,
      %c0_31 = arith.constant 0 : index
      %c0_32 = arith.constant 0 : index
      %51 = vector.load %arg7[%c0_31, %c0_32] : memref<16x1xf32, #tpu.memory_space<vmem>>, vector<16x1xf32>
      tpu.vector_store %arg7[%c0_31, %c0_32], %38 {strides = array<i32>} : memref<16x1xf32, #tpu.memory_space<vmem>>, vector<16x1xf32>,
    } else {
    }
    %c0_10 = arith.constant 0 : index
    %c0_11 = arith.constant 0 : index
    %18 = vector.load %arg3[%c0_10, %c0_11] : memref<16x1xi32, #tpu.memory_space<vmem>>, vector<16x1xi32>
    %c0_12 = arith.constant 0 : index
    %c0_13 = arith.constant 0 : index
    %19 = vector.load %arg9[%c0_12, %c0_13] : memref<16x1xf32, #tpu.memory_space<vmem>>, vector<16x1xf32>
    %20 = vector.broadcast %18 : vector<16x1xi32> to vector<16x128xi32>
    %21 = arith.cmpi eq, %11, %20 : vector<16x128xi32>
    %cst_14 = arith.constant 0.000000e+00 : f32
    %22 = vector.broadcast %cst_14 : f32 to vector<16x128xf32>
    %23 = arith.select %21, %5, %22 : vector<16x128xi1>, vector<16x128xf32>
    %cst_15 = arith.constant dense<0.000000e+00> : vector<16xf32>
    %24 = vector.multi_reduction <add>, %23, %cst_15 [1] : vector<16x128xf32> to vector<16xf32>
    %25 = vector.shape_cast %24 : vector<16xf32> to vector<16x1xf32>
    %26 = arith.addf %19, %25 : vector<16x1xf32>
    %c0_16 = arith.constant 0 : index
    %c0_17 = arith.constant 0 : index
    %27 = vector.load %arg9[%c0_16, %c0_17] : memref<16x1xf32, #tpu.memory_space<vmem>>, vector<16x1xf32>
    tpu.vector_store %arg9[%c0_16, %c0_17], %26 {strides = array<i32>} : memref<16x1xf32, #tpu.memory_space<vmem>>, vector<16x1xf32>,
    %c0_i32_18 = arith.constant 0 : i32
    %28 = arith.cmpi eq, %arg1, %c0_i32_18 : i32
    %29 = arith.extui %28 : i1 to i32
    %c0_i32_19 = arith.constant 0 : i32
    %30 = arith.cmpi ne, %29, %c0_i32_19 : i32
    scf.if %30 {
      %c0_20 = arith.constant 0 : index
      %c0_21 = arith.constant 0 : index
      %31 = vector.load %arg7[%c0_20, %c0_21] : memref<16x1xf32, #tpu.memory_space<vmem>>, vector<16x1xf32>
      %c0_22 = arith.constant 0 : index
      %c0_23 = arith.constant 0 : index
      %32 = vector.load %arg8[%c0_22, %c0_23] : memref<16x1xf32, #tpu.memory_space<vmem>>, vector<16x1xf32>
      %33 = math.log %32 : vector<16x1xf32>
      %34 = arith.addf %31, %33 : vector<16x1xf32>
      %c0_24 = arith.constant 0 : index
      %c0_25 = arith.constant 0 : index
      %35 = vector.load %arg9[%c0_24, %c0_25] : memref<16x1xf32, #tpu.memory_space<vmem>>, vector<16x1xf32>
      %36 = arith.subf %34, %35 : vector<16x1xf32>
      %c0_26 = arith.constant 0 : index
      %c0_27 = arith.constant 0 : index
      %37 = vector.load %arg6[%c0_26, %c0_27] : memref<16x1xf32, #tpu.memory_space<vmem>>, vector<16x1xf32>
      tpu.vector_store %arg6[%c0_26, %c0_27], %36 {strides = array<i32>} : memref<16x1xf32, #tpu.memory_space<vmem>>, vector<16x1xf32>,
    } else {
    }
    return
  }
  func.func @transform_0(%arg0: i32, %arg1: i32) -> (i32, i32) {
    %c0_i32 = arith.constant 0 : i32
    %c0_i32_0 = arith.constant 0 : i32
    return %arg0, %c0_i32 : i32, i32
  }
  func.func @transform_1(%arg0: i32, %arg1: i32) -> (i32, i32) {
    %c0_i32 = arith.constant 0 : i32
    %c0_i32_0 = arith.constant 0 : i32
    return %arg0, %c0_i32 : i32, i32
  }
  func.func @transform_2(%arg0: i32, %arg1: i32) -> (i32, i32) {
    %c0_i32 = arith.constant 0 : i32
    %c0_i32_0 = arith.constant 0 : i32
    return %c0_i32, %arg1 : i32, i32
  }
  func.func @transform_3(%arg0: i32, %arg1: i32) -> (i32, i32) {
    %c0_i32 = arith.constant 0 : i32
    return %arg0, %arg1 : i32, i32
  }
  func.func @transform_4(%arg0: i32, %arg1: i32) -> (i32, i32) {
    %c0_i32 = arith.constant 0 : i32
    %c0_i32_0 = arith.constant 0 : i32
    return %arg0, %c0_i32 : i32, i32
  }
}

</mosaic_0001>

<bundles_post_ra>
// kernel: tpu_custom_call.1
= control target key start
LH: loop header
LB: loop body
LE: loop exit
PB: predicated region body
PF: predicated region fallthrough
CT: control target
= control target key end

     0   :  { %v346_v1 = vmov 0.0   ;;  %vm347_vm0 = vmmov 0   ;;  %s425_s0 = inlined_call_operand.vmem [shape: bf16[16,32], index: 0, kind: input, shape index: {}]   ;;  %s426_s1 = inlined_call_operand.vmem [shape: s32[16,1], index: 1, kind: input, shape index: {}]   ;;  %s427_s2 = inlined_call_operand.vmem [shape: bf16[32,128], index: 2, kind: input, shape index: {}]   ;;  %s428_s3 = inlined_call_operand.hbm [shape: bf16[16,128], index: 3, kind: output, shape index: {0}]   ;;  %s429_s4 = inlined_call_operand.vmem [shape: f32[16,1], index: 4, kind: output, shape index: {1}]  }
   0x1   :  { %v307_v0 = vld [vmem:[%s427_s2] sm:$0xff]   ;;  %290 = vmatprep.subr.bf16.mxu0 %v346_v1  ;;  %v308_v2 = vld [vmem:[%s427_s2 + $0x8] sm:$0xff]   ;;  %294 = vmatprep.mubr.msk.bf16.mxu0 %vm347_vm0, %v346_v1 }
   0x2   :  { %291 = vmatpush3.bf16.msra.mxu0 %v307_v0 }
   0x3   :  { %292 = vmatprep.subr.bf16.mxu0 %v346_v1 }
   0x4   :  { %10 = vsyncpa [#allocation6], 0  ;;  %v309_v3 = vld [vmem:[%s425_s0] sm:$0xff]   ;;  %vm52_vm1 = vcmask 261120   ;;  %v348_v4 = vmov 0   ;;  %v108_v5 = vlaneseq  ;;  %vm22_vm3 = vcmask 7168  }
   0x5   :  { %306 = vset.pattern.permute.xlu0 %v348_v4  ;;  %305 = vset.pattern.permute.xlu1 %v348_v4  ;;  %v349_v14 = vmov -1e+30   ;;  %25 = vst.msk [vmem:[#allocation3] sm:$0xff] %vm22_vm3, %v346_v1  ;;  %26 = vst.msk [vmem:[#allocation3 + $0x8] sm:$0xff] %vm22_vm3, %v346_v1  ;;  %v212_v15 = vld [vmem:[%s426_s1] sm:$0xff]  ;;  %v213_v24 = vld [vmem:[%s426_s1 + $0x8] sm:$0xff] }
   0x6   :  { %293 = vmatpush3.bf16.msra.mxu0 %v308_v2  ;;  %v109_v6 = vand.u32 127, %v108_v5  ;;  %23 = vst.msk [vmem:[#allocation2] sm:$0xff] %vm22_vm3, %v349_v14  ;;  %24 = vst.msk [vmem:[#allocation2 + $0x8] sm:$0xff] %vm22_vm3, %v349_v14  ;;  %s350_s1 = smov [#allocation5]  }
   0x7   :  { %27 = vst.msk [vmem:[#allocation4] sm:$0xff] %vm22_vm3, %v346_v1  ;;  %28 = vst.msk [vmem:[#allocation4 + $0x8] sm:$0xff] %vm22_vm3, %v346_v1  ;;  %s259_s23 = sshll.u32 %s350_s1, 4  ;;  %s260_s23 = int_to_ptr.vmem [resolvable:$true] %s259_s23 }
   0x8   :  { %vm164_vm2 = vcmp.lt.s32.totalorder %v109_v6, 64  ;;  %s322_s24 = scalar_lea.vmem %s260_s23, 128  ;;  %p327_p1 = scmp.lt.s32.totalorder %s260_s23, %s260_s23 }
   0x9   :  { %295 = vmatmul.mubr.msk.bf16.vlgmr.msra.gmra.mrb[0].mxu0 %vm52_vm1, %v309_v3  ;;  %p323_p0 = scmp.ne.s32.totalorder %s260_s23, %s322_s24  ;;  %p328_p2 = scmp.lt.s32.totalorder %s322_s24, %s322_s24 }
   0xb   :  { %p329_p3 = por %p328_p2, %p327_p1 }
   0xd   :  { %v167_v16 = vld [vmem:[#allocation2] sm:$0xff]  ;;  %v168_v19 = vld [vmem:[#allocation2 + $0x8] sm:$0xff]  ;;  %p330_p4 = pnand %p329_p3, %p323_p0 }
   0xe   :  { %v214_v37 = vld [vmem:[#allocation4] sm:$0xff] }
  0xdc   :  { %v90_v7 = vpop.f32.mrb[0].mxu0 }
  0xdd   :  { %v296_v8 = vpop.f32.mrb[1].mxu0  ;;  %v165_v9 = vsel %vm164_vm2, %v90_v7, -1e+30 }
  0xde   :  { %169 = vmax.xlane.f32.xlu0 %v165_v9  ;;  %v93_v10 = vpop.f32.mrb[2].mxu0 }
  0xdf   :  { %v285_v11 = vpack.c.bf16 %v93_v10, %v90_v7  ;;  %v297_v12 = vpop.f32.mrb[3].mxu0  ;;  %v166_v13 = vsel %vm164_vm2, %v93_v10, -1e+30 }
  0xe1   :  { %286 = vst [vmem:[#allocation5] sm:$0xff] %v285_v11  }
  0xe2   :  { %171 = vmax.xlane.f32.xlu0 %v166_v13 }
  0xf8   :  { %217 = vperm.xlu0 %306, %v212_v15  }
 0x16b   :  { %v170_v17 = vpop.xlane.xlu0 %169 }
 0x16c   :  { %v173_v18 = vmax.f32 %v167_v16, %v170_v17 }
 0x16e   :  { %v175_v20 = vsub.f32 %v167_v16, %v173_v18  ;;  %210 = vst.msk [vmem:[#allocation2] sm:$0xff] %vm22_vm3, %v173_v18  ;;  %187 = vperm.xlu1 %305, %v173_v18  }
 0x16f   :  { %v172_v21 = vpop.xlane.xlu0 %171 }
 0x170   :  { %v174_v22 = vmax.f32 %v168_v19, %v172_v21 }
 0x172   :  { %v176_v23 = vsub.f32 %v168_v19, %v174_v22  ;;  %211 = vst.msk [vmem:[#allocation2 + $0x8] sm:$0xff] %vm22_vm3, %v174_v22  ;;  %192 = vperm.xlu1 %305, %v174_v22  }
 0x176   :  { %220 = vperm.xlu1 %305, %v213_v24  }
 0x177   :  { %v218_v25 = vpop.permute.xlu0 %217 }
 0x178   :  { %vm222_vm4 = vcmp.eq.s32.totalorder %v109_v6, %v218_v25 }
 0x179   :  { %v224_v26 = vsel %vm222_vm4, %v90_v7, 0.0 }
 0x17a   :  { %226 = vadd.xlane.f32.xlu0 %v224_v26 }
 0x1ed   :  { %v188_v27 = vpop.permute.xlu1 %187 }
 0x1ee   :  { %v195_v28 = vsub.f32 %v165_v9, %v188_v27 }
 0x1f0   :  { %v197_v29 = vmul.f32 1.442695, %v195_v28 }
 0x1f1   :  { %v193_v30 = vpop.permute.xlu1 %192 }
 0x1f2   :  { %310 = vpow2.f32 %v197_v29  ;;  %v196_v31 = vsub.f32 %v166_v13, %v193_v30 }
 0x1f4   :  { %v199_v32 = vmul.f32 1.442695, %v196_v31 }
 0x1f5   :  { %v221_v34 = vpop.permute.xlu1 %220 }
 0x1f6   :  { %312 = vpow2.f32 %v199_v32  ;;  %vm223_vm5 = vcmp.eq.s32.totalorder %v109_v6, %v221_v34 }
 0x1f7   :  { %v225_v36 = vsel %vm223_vm5, %v93_v10, 0.0 }
 0x1fc   :  { %v311_v33 = vpop.eup %310 }
 0x1fd   :  { %201 = vadd.xlane.f32.xlu1 %v311_v33 }
 0x200   :  { %v313_v35 = vpop.eup %312 }
 0x201   :  { %203 = vadd.xlane.f32.xlu1 %v313_v35 }
 0x205   :  { %228 = vadd.xlane.f32.xlu1 %v225_v36 }
 0x207   :  { %v227_v38 = vpop.xlane.xlu0 %226 }
 0x208   :  { %v230_v39 = vadd.f32 %v227_v38, %v214_v37 }
 0x20a   :  { %233 = vst.msk [vmem:[#allocation4] sm:$0xff] %vm22_vm3, %v230_v39 }
 0x20b   :  { %333 = shalt.err (!%p330_p4)
}
 0x20c   :  { %s334_s27 = scalar_lea.hbm %s428_s3, 128 }
 0x20d   :  { %p335_p5 = scmp.ne.s32.totalorder %s428_s3, %s334_s27  ;;  %p338_p6 = scmp.lt.u32.totalorder %s334_s27, %s428_s3 }
 0x20f   :  { %p340_p7 = pnand %p338_p6, %p335_p5 }
 0x211   :  { %343 = shalt.err (!%p340_p7)
}
 0x212   :  { %s351_s6 = smov 64   ;;  %s352_s7 = smov 4   ;;  %v177_v40 = vmul.f32 1.442695, %v175_v20  ;;  %v179_v41 = vmul.f32 1.442695, %v176_v23 }
 0x213   :  { %265 = dma.vmem_to_hbm [thread:$0]  %s260_s23, 128, %s428_s3, [#allocation6], %s351_s6, %s351_s6, %s352_s7   ;;  %v181_v43 = vld [vmem:[#allocation3] sm:$0xff]  ;;  %v182_v47 = vld [vmem:[#allocation3 + $0x8] sm:$0xff]  ;;  %v215_v52 = vld [vmem:[#allocation4 + $0x8] sm:$0xff] }
 0x214   :  { %314 = vpow2.f32 %v177_v40  ;;  %v238_v59 = vld [vmem:[#allocation2] sm:$0xff]  ;;  %v239_v1 = vld [vmem:[#allocation2 + $0x8] sm:$0xff] }
 0x215   :  { %316 = vpow2.f32 %v179_v41  ;;  %v248_v62 = vld [vmem:[#allocation4] sm:$0xff] }
 0x21e   :  { %v315_v42 = vpop.eup %314 }
 0x21f   :  { %v183_v44 = vmul.f32 %v315_v42, %v181_v43  ;;  %v317_v45 = vpop.eup %316 }
 0x220   :  { %v184_v49 = vmul.f32 %v317_v45, %v182_v47 }
 0x28a   :  { %v202_v46 = vpop.xlane.xlu1 %201 }
 0x28b   :  { %v205_v48 = vadd.f32 %v202_v46, %v183_v44 }
 0x28d   :  { %208 = vst.msk [vmem:[#allocation3] sm:$0xff] %vm22_vm3, %v205_v48 }
 0x28e   :  { %v204_v50 = vpop.xlane.xlu1 %203 }
 0x28f   :  { %v206_v51 = vadd.f32 %v204_v50, %v184_v49 }
 0x291   :  { %209 = vst.msk [vmem:[#allocation3 + $0x8] sm:$0xff] %vm22_vm3, %v206_v51 }
 0x292   :  { %v229_v53 = vpop.xlane.xlu1 %228 }
 0x293   :  { %v231_v54 = vadd.f32 %v229_v53, %v215_v52 }
 0x294   :  { %v240_v55 = vld [vmem:[#allocation3] sm:$0xff] }
 0x295   :  { %318 = vlog2.f32 %v240_v55  ;;  %234 = vst.msk [vmem:[#allocation4 + $0x8] sm:$0xff] %vm22_vm3, %v231_v54 }
 0x298   :  { %v241_v56 = vld [vmem:[#allocation3 + $0x8] sm:$0xff] }
 0x299   :  { %320 = vlog2.f32 %v241_v56 }
 0x29c   :  { %v249_v3 = vld [vmem:[#allocation4 + $0x8] sm:$0xff] }
 0x29f   :  { %v319_v57 = vpop.eup %318 }
 0x2a0   :  { %v243_v58 = vmul.f32 0.6931472, %v319_v57 }
 0x2a2   :  { %v246_v60 = vadd.f32 %v243_v58, %v238_v59 }
 0x2a3   :  { %v321_v61 = vpop.eup %320 }
 0x2a4   :  { %v250_v63 = vsub.f32 %v246_v60, %v248_v62  ;;  %v245_v0 = vmul.f32 0.6931472, %v321_v61 }
 0x2a6   :  { %252 = vst.msk [vmem:[%s429_s4] sm:$0xff] %vm22_vm3, %v250_v63  ;;  %v247_v2 = vadd.f32 %v245_v0, %v239_v1 }
 0x2a8   :  { %v251_v4 = vsub.f32 %v247_v2, %v249_v3 }
 0x2aa   :  { %253 = vst.msk [vmem:[%s429_s4 + $0x8] sm:$0xff] %vm22_vm3, %v251_v4 }
 0x2ab   :  { %344 = dma.done.wait [#allocation6], 128  }
 0x2ac   :  { %345 = vsyncadd [#allocation6], 4294967168 }
 0x2ad   :  { %273 = vsyncpa [#allocation6], 1 }

</bundles_post_ra>
